<compile_context>
chip_gen: v7x
topology: tpu7x:2x2x1
jax: 0.10.0
libtpu: 0.0.40
codegen_flags: <defaults>
</compile_context>

<pallas_src>
import jax
import jax.numpy as jnp
from jax.experimental import pallas as pl
from jax.experimental.pallas import tpu as pltpu


def _round_up(x, m):
    return (x + m - 1) // m * m


def generator_kernel(x_ref, w1_ref, b1_ref, w2_ref, b2_ref, o_ref):
    # Linear 1 + ReLU: bf16 MXU matmul, f32 accumulate, f32 elementwise.
    x = x_ref[...].astype(jnp.bfloat16)
    h = jnp.dot(x, w1_ref[...], preferred_element_type=jnp.float32) + b1_ref[...]
    h = jnp.maximum(h, 0.0)
    # Linear 2 + Sigmoid.
    y = jnp.dot(h.astype(jnp.bfloat16), w2_ref[...],
                preferred_element_type=jnp.float32) + b2_ref[...]
    o_ref[...] = jax.nn.sigmoid(y).astype(o_ref.dtype)


def prepare_params(w1_t, b1, w2_t, b2):
    """One-time parameter prep (hoisted out of the per-call forward):
    weights go on the wire already in bf16 (the MXU input dtype), biases in
    f32 with shape (1, dim) for in-kernel broadcasting."""
    w1p = w1_t.astype(jnp.bfloat16)
    w2p = w2_t.astype(jnp.bfloat16)
    b1p = b1.reshape(1, -1).astype(jnp.float32)
    b2p = b2.reshape(1, -1).astype(jnp.float32)
    return w1p, b1p, w2p, b2p


def generator_forward(x, w1p, b1p, w2p, b2p, *, tb=2048):
    """x: (B, input_dim); w1p: (input_dim, hidden_dim) bf16; b1p: (1, hidden_dim) f32;
    w2p: (hidden_dim, input_dim) bf16; b2p: (1, input_dim) f32.
    Returns (B, input_dim) in x.dtype."""
    B, input_dim = x.shape
    hidden_dim = w1p.shape[1]

    # Batch tile: multiple of 8 sublanes, as large as possible to amortize the
    # ~0.35 us/grid-step fixed cost, but keep >= 2 grid steps whenever the
    # batch allows so v7x can shard the "parallel" axis across its 2 TCs.
    B8 = _round_up(B, 8)
    TB = min(tb, B8)
    if B8 // TB < 2 and B8 >= 16:
        TB = _round_up(pl.cdiv(B8, 2), 8)
    grid = (pl.cdiv(B, TB),)

    itemsize = jnp.dtype(x.dtype).itemsize
    cost = pl.CostEstimate(
        flops=4 * B * input_dim * hidden_dim,          # two (B,in)x(in,hid)-sized matmuls
        transcendentals=B * input_dim,                  # sigmoid exp per output element
        bytes_accessed=(B * input_dim * itemsize        # x stream
                        + B * input_dim * itemsize      # out stream
                        + 2 * input_dim * hidden_dim * 2  # bf16 weights (read once)
                        + (input_dim + hidden_dim) * 4),  # f32 biases
    )

    out = pl.pallas_call(
        generator_kernel,
        out_shape=jax.ShapeDtypeStruct((B, input_dim), x.dtype),
        grid=grid,
        in_specs=[
            # Batch-tiled activations at natural feature width (full-dim lane block).
            pl.BlockSpec((TB, input_dim), lambda i: (i, 0)),
            # Weights / biases: constant block index -> resident in VMEM.
            pl.BlockSpec((input_dim, hidden_dim), lambda i: (0, 0)),
            pl.BlockSpec((1, hidden_dim), lambda i: (0, 0)),
            pl.BlockSpec((hidden_dim, input_dim), lambda i: (0, 0)),
            pl.BlockSpec((1, input_dim), lambda i: (0, 0)),
        ],
        out_specs=pl.BlockSpec((TB, input_dim), lambda i: (i, 0)),
        compiler_params=pltpu.CompilerParams(
            dimension_semantics=("parallel",)),
        cost_estimate=cost,
    )(x, w1p, b1p, w2p, b2p)
    return out


def init_params(key, input_dim, hidden_dim, dtype=jnp.float32):
    """Deterministic init mimicking nn.Linear's U(-1/sqrt(fan_in), 1/sqrt(fan_in))."""
    k1, k2, k3, k4 = jax.random.split(key, 4)
    s1 = 1.0 / jnp.sqrt(input_dim)
    s2 = 1.0 / jnp.sqrt(hidden_dim)
    # Stored already transposed: (in, out), equivalent to PyTorch's x @ W.T + b.
    w1_t = jax.random.uniform(k1, (input_dim, hidden_dim), dtype, -s1, s1)
    b1 = jax.random.uniform(k2, (1, hidden_dim), dtype, -s1, s1)
    w2_t = jax.random.uniform(k3, (hidden_dim, input_dim), dtype, -s2, s2)
    b2 = jax.random.uniform(k4, (1, input_dim), dtype, -s2, s2)
    return w1_t, b1, w2_t, b2


if __name__ == "__main__":
    key = jax.random.PRNGKey(0)
    k_noise, k_params = jax.random.split(key)

    batch = 8
    input_dim = 16
    hidden_dim = 32
    # TODO(synk): at shapes this tiny the pallas_call fixed overhead dominates;
    # the kernel pays off when batch is in the thousands of rows (grid >= 2).

    noise = jax.random.normal(k_noise, (batch, input_dim), jnp.float32)
    w1_t, b1, w2_t, b2 = init_params(k_params, input_dim, hidden_dim)
    # One-time parameter prep (would be done at module init, not per forward).
    w1p, b1p, w2p, b2p = prepare_params(w1_t, b1, w2_t, b2)

    out = generator_forward(noise, w1p, b1p, w2p, b2p)
    out = jax.block_until_ready(out)
    assert out.shape == (batch, input_dim)

    # Pure-JAX f32 reference of the PyTorch forward pass (kernel uses bf16
    # weights/activations on the MXU, so the tolerance is loosened accordingly).
    ref_f32 = jax.nn.sigmoid(jnp.maximum(noise @ w1_t + b1, 0.0) @ w2_t + b2)
    assert jnp.allclose(out, ref_f32, atol=2e-2, rtol=2e-2)

    # Tight check against a reference that uses the same bf16-cast weights/inputs.
    w1_bf = w1_t.astype(jnp.bfloat16).astype(jnp.float32)
    w2_bf = w2_t.astype(jnp.bfloat16).astype(jnp.float32)
    h_ref = jnp.maximum(
        jnp.dot(noise.astype(jnp.bfloat16).astype(jnp.float32), w1_bf) + b1, 0.0)
    ref_bf = jax.nn.sigmoid(
        jnp.dot(h_ref.astype(jnp.bfloat16).astype(jnp.float32), w2_bf) + b2)
    assert jnp.allclose(out, ref_bf, atol=2e-3, rtol=2e-3)

    print("KERNEL_OK")
</pallas_src>

<mosaic_0001>
module attributes {stable_mosaic.version = 11 : i64} {
  func.func @generator_kernel(%arg0: i32, %arg1: memref<8x16xf32, #tpu.memory_space<vmem>>, %arg2: memref<16x32xbf16, #tpu.memory_space<vmem>>, %arg3: memref<1x32xf32, #tpu.memory_space<vmem>>, %arg4: memref<32x16xbf16, #tpu.memory_space<vmem>>, %arg5: memref<1x16xf32, #tpu.memory_space<vmem>>, %arg6: memref<8x16xf32, #tpu.memory_space<vmem>>) attributes {dimension_semantics = [#tpu.dimension_semantics<parallel>], iteration_bounds = array<i64: 1>, scalar_prefetch = 0 : i64, scratch_operands = 0 : i64, tpu.core_type = #tpu.core_type<tc>, window_params = [{transform_indices = @transform_0, window_bounds = array<i64: 8, 16>}, {pipeline_mode = #tpu.pipeline_mode<synchronous>, transform_indices = @transform_1, window_bounds = array<i64: 16, 32>}, {pipeline_mode = #tpu.pipeline_mode<synchronous>, transform_indices = @transform_2, window_bounds = array<i64: 1, 32>}, {pipeline_mode = #tpu.pipeline_mode<synchronous>, transform_indices = @transform_3, window_bounds = array<i64: 32, 16>}, {pipeline_mode = #tpu.pipeline_mode<synchronous>, transform_indices = @transform_4, window_bounds = array<i64: 1, 16>}, {transform_indices = @transform_5, window_bounds = array<i64: 8, 16>}]} {
    %c0 = arith.constant 0 : index
    %c0_0 = arith.constant 0 : index
    %0 = vector.load %arg1[%c0, %c0_0] : memref<8x16xf32, #tpu.memory_space<vmem>>, vector<8x16xf32>
    %1 = arith.truncf %0 : vector<8x16xf32> to vector<8x16xbf16>
    %c0_1 = arith.constant 0 : index
    %c0_2 = arith.constant 0 : index
    %2 = vector.load %arg2[%c0_1, %c0_2] : memref<16x32xbf16, #tpu.memory_space<vmem>>, vector<16x32xbf16>
    %cst = arith.constant dense<0.000000e+00> : vector<8x32xf32>
    %3 = tpu.matmul %1, %2, %cst {dimension_numbers = #tpu.dot_dimension_numbers<[1], [0], [0], [1], [0, 0, 1, 1], [], []>} : vector<8x16xbf16>, vector<16x32xbf16>, vector<8x32xf32> -> vector<8x32xf32>
    %c0_3 = arith.constant 0 : index
    %c0_4 = arith.constant 0 : index
    %4 = vector.load %arg3[%c0_3, %c0_4] : memref<1x32xf32, #tpu.memory_space<vmem>>, vector<1x32xf32>
    %5 = vector.broadcast %4 : vector<1x32xf32> to vector<8x32xf32>
    %6 = arith.addf %3, %5 : vector<8x32xf32>
    %cst_5 = arith.constant 0.000000e+00 : f32
    %7 = vector.broadcast %cst_5 : f32 to vector<8x32xf32>
    %8 = arith.maximumf %6, %7 : vector<8x32xf32>
    %9 = arith.truncf %8 : vector<8x32xf32> to vector<8x32xbf16>
    %c0_6 = arith.constant 0 : index
    %c0_7 = arith.constant 0 : index
    %10 = vector.load %arg4[%c0_6, %c0_7] : memref<32x16xbf16, #tpu.memory_space<vmem>>, vector<32x16xbf16>
    %cst_8 = arith.constant dense<0.000000e+00> : vector<8x16xf32>
    %11 = tpu.matmul %9, %10, %cst_8 {dimension_numbers = #tpu.dot_dimension_numbers<[1], [0], [0], [1], [0, 0, 1, 1], [], []>} : vector<8x32xbf16>, vector<32x16xbf16>, vector<8x16xf32> -> vector<8x16xf32>
    %c0_9 = arith.constant 0 : index
    %c0_10 = arith.constant 0 : index
    %12 = vector.load %arg5[%c0_9, %c0_10] : memref<1x16xf32, #tpu.memory_space<vmem>>, vector<1x16xf32>
    %13 = vector.broadcast %12 : vector<1x16xf32> to vector<8x16xf32>
    %14 = arith.addf %11, %13 : vector<8x16xf32>
    %15 = arith.negf %14 : vector<8x16xf32>
    %16 = math.exp %15 : vector<8x16xf32>
    %cst_11 = arith.constant 1.000000e+00 : f32
    %17 = vector.broadcast %cst_11 : f32 to vector<8x16xf32>
    %18 = arith.addf %17, %16 : vector<8x16xf32>
    %19 = arith.divf %17, %18 : vector<8x16xf32>
    %c0_12 = arith.constant 0 : index
    %c0_13 = arith.constant 0 : index
    %20 = vector.load %arg6[%c0_12, %c0_13] : memref<8x16xf32, #tpu.memory_space<vmem>>, vector<8x16xf32>
    tpu.vector_store %arg6[%c0_12, %c0_13], %19 {strides = array<i32>} : memref<8x16xf32, #tpu.memory_space<vmem>>, vector<8x16xf32>,
    return
  }
  func.func @transform_0(%arg0: i32) -> (i32, i32) {
    %c0_i32 = arith.constant 0 : i32
    %c0_i32_0 = arith.constant 0 : i32
    return %arg0, %c0_i32 : i32, i32
  }
  func.func @transform_1(%arg0: i32) -> (i32, i32) {
    %c0_i32 = arith.constant 0 : i32
    %c0_i32_0 = arith.constant 0 : i32
    %c0_i32_1 = arith.constant 0 : i32
    return %c0_i32, %c0_i32_0 : i32, i32
  }
  func.func @transform_2(%arg0: i32) -> (i32, i32) {
    %c0_i32 = arith.constant 0 : i32
    %c0_i32_0 = arith.constant 0 : i32
    %c0_i32_1 = arith.constant 0 : i32
    return %c0_i32, %c0_i32_0 : i32, i32
  }
  func.func @transform_3(%arg0: i32) -> (i32, i32) {
    %c0_i32 = arith.constant 0 : i32
    %c0_i32_0 = arith.constant 0 : i32
    %c0_i32_1 = arith.constant 0 : i32
    return %c0_i32, %c0_i32_0 : i32, i32
  }
  func.func @transform_4(%arg0: i32) -> (i32, i32) {
    %c0_i32 = arith.constant 0 : i32
    %c0_i32_0 = arith.constant 0 : i32
    %c0_i32_1 = arith.constant 0 : i32
    return %c0_i32, %c0_i32_0 : i32, i32
  }
  func.func @transform_5(%arg0: i32) -> (i32, i32) {
    %c0_i32 = arith.constant 0 : i32
    %c0_i32_0 = arith.constant 0 : i32
    return %arg0, %c0_i32 : i32, i32
  }
}

</mosaic_0001>

<bundles_post_ra>
// kernel: tpu_custom_call.1
= control target key start
LH: loop header
LB: loop body
LE: loop exit
PB: predicated region body
PF: predicated region fallthrough
CT: control target
= control target key end

     0   :  { %v234_v1 = vmov 0.0   ;;  %vm39_vm0 = vcmask 130048   ;;  %vm235_vm1 = vmmov 0   ;;  %s299_s0 = inlined_call_operand.vmem [shape: f32[8,16], index: 0, kind: input, shape index: {}]   ;;  %s300_s1 = inlined_call_operand.vmem [shape: bf16[16,32], index: 1, kind: input, shape index: {}]   ;;  %s301_s2 = inlined_call_operand.vmem [shape: f32[1,32], index: 2, kind: input, shape index: {}]   ;;  %s302_s3 = inlined_call_operand.vmem [shape: bf16[32,16], index: 3, kind: input, shape index: {}]   ;;  %s303_s4 = inlined_call_operand.vmem [shape: f32[1,16], index: 4, kind: input, shape index: {}]   ;;  %s304_s5 = inlined_call_operand.hbm [shape: f32[8,16], index: 5, kind: output, shape index: {}]  }
   0x1   :  { %v203_v0 = vld [vmem:[%s300_s1] sm:$0xff]   ;;  %186 = vmatprep.subr.bf16.mxu0 %v234_v1  ;;  %192 = vmatprep.subr.bf16.mxu1 %v234_v1 }
   0x2   :  { %v22_v2 = vld [vmem:[%s299_s0] sm:$0xff]  ;;  %187 = vmatpush3.bf16.msra.mxu0 %v203_v0  ;;  %188 = vmatprep.mubr.msk.bf16.mxu0 %vm235_vm1, %v234_v1 }
   0x3   :  { %v23_v3 = vpack.c.bf16 %v22_v2, %v22_v2  ;;  %196 = vmatprep.mubr.msk.bf16.mxu1 %vm235_vm1, %v234_v1 }
   0x4   :  { %10 = vsyncpa [#allocation3], 0  ;;  %v204_v4 = vld [vmem:[%s302_s3] sm:$0xff]   ;;  %v205_v5 = vld [vmem:[%s302_s3 + $0x8] sm:$0xff]   ;;  %vm108_vm2 = vcmask 261120  }
   0x5   :  { %189 = vmatmul.mubr.msk.bf16.vlgmr.msra.gmra.mrb[0].mxu0 %vm39_vm0, %v23_v3  ;;  %193 = vmatpush3.bf16.msra.mxu1 %v204_v4  ;;  %v173_v6 = vld [vmem:[%s301_s2] ss:$0 sm:$0xff]  ;;  %s236_s2 = smov [#allocation2]  }
   0x6   :  { %194 = vmatprep.subr.bf16.mxu1 %v234_v1  ;;  %v176_v14 = vld [vmem:[%s303_s4] ss:$0 sm:$0xff]  ;;  %s165_s3 = sshll.u32 %s236_s2, 4  ;;  %s166_s3 = int_to_ptr.vmem [resolvable:$true] %s165_s3 }
   0x7   :  { %s210_s28 = scalar_lea.vmem %s166_s3, 128  ;;  %p215_p1 = scmp.lt.s32.totalorder %s166_s3, %s166_s3 }
   0x8   :  { %p211_p0 = scmp.ne.s32.totalorder %s166_s3, %s210_s28  ;;  %p216_p2 = scmp.lt.s32.totalorder %s210_s28, %s210_s28 }
   0x9   :  { %195 = vmatpush3.bf16.msra.mxu1 %v205_v5 }
   0xa   :  { %p217_p3 = por %p216_p2, %p215_p1 }
   0xc   :  { %p218_p4 = pnand %p217_p3, %p211_p0 }
  0xd8   :  { %v77_v7 = vpop.f32.mrb[0].mxu0 }
  0xd9   :  { %v78_v8 = vadd.f32 %v173_v6, %v77_v7  ;;  %v190_v9 = vpop.f32.mrb[1].mxu0 }
  0xda   :  { %v80_v10 = vpop.f32.mrb[2].mxu0 }
  0xdb   :  { %v83_v11 = vmax.f32 %v78_v8, 0.0  ;;  %v191_v12 = vpop.f32.mrb[3].mxu0 }
  0xdd   :  { %v84_v13 = vpack.c.bf16 %v83_v11, %v83_v11 }
  0xdf   :  { %197 = vmatmul.mubr.msk.bf16.vlgmr.msra.gmra.mrb[0].mxu1 %vm108_vm2, %v84_v13 }
 0x1b2   :  { %v146_v15 = vpop.f32.mrb[0].mxu1 }
 0x1b3   :  { %v147_v16 = vadd.f32 %v176_v14, %v146_v15  ;;  %v198_v17 = vpop.f32.mrb[1].mxu1 }
 0x1b4   :  { %v149_v18 = vpop.f32.mrb[2].mxu1 }
 0x1b5   :  { %v180_v19 = vmul.f32 -1.442695, %v147_v16  ;;  %v199_v20 = vpop.f32.mrb[3].mxu1 }
 0x1b7   :  { %206 = vpow2.f32 %v180_v19 }
 0x1c1   :  { %v207_v21 = vpop.eup %206 }
 0x1c2   :  { %v155_v22 = vadd.f32 1.0, %v207_v21 }
 0x1c4   :  { %208 = vrcp.f32 %v155_v22 }
 0x1ce   :  { %v209_v23 = vpop.eup %208 }
 0x1cf   :  { %158 = vst.msk [vmem:[#allocation2] sm:$0xff] %vm39_vm0, %v209_v23 }
 0x1d0   :  { %221 = shalt.err (!%p218_p4)
}
 0x1d1   :  { %s222_s30 = scalar_lea.hbm %s304_s5, 128 }
 0x1d2   :  { %p223_p5 = scmp.ne.s32.totalorder %s304_s5, %s222_s30  ;;  %p226_p6 = scmp.lt.u32.totalorder %s222_s30, %s304_s5 }
 0x1d4   :  { %p228_p7 = pnand %p226_p6, %p223_p5 }
 0x1d6   :  { %231 = shalt.err (!%p228_p7)
}
 0x1d7   :  { %168 = dma.vmem_to_hbm [thread:$0]  %s166_s3, 128, %s304_s5, [#allocation3]  }
 0x1d8   :  { %232 = dma.done.wait [#allocation3], 128  }
 0x1d9   :  { %233 = vsyncadd [#allocation3], 4294967168 }
 0x1da   :  { %172 = vsyncpa [#allocation3], 1 }

</bundles_post_ra>
